<compile_context>
chip_gen: v7x
topology: tpu7x:2x2x1
jax: 0.10.0
libtpu: 0.0.40
codegen_flags: <defaults>
</compile_context>

<pallas_src>
import functools

import jax
import jax.numpy as jnp
from jax.experimental import pallas as pl
from jax.experimental.pallas import tpu as pltpu

_MIB = 1024 * 1024


# ---------------------------------------------------------------------------
# Shared elementwise math
# ---------------------------------------------------------------------------
def _modulating_factor(pt, gamma):
    """(1 - pt) ** gamma; small integer gamma lowered to repeated VPU muls."""
    w = 1.0 - pt
    g = float(gamma)
    if g == int(g) and 0 <= int(g) <= 8:
        ig = int(g)
        if ig == 0:
            return jnp.ones_like(w)
        out = w
        for _ in range(ig - 1):
            out = out * w
        return out
    # Non-integer gamma: pow via exp/log. Clamp avoids NaN at w ~ -0 from
    # rounding (slightly more robust than the torch reference; documented).
    return jnp.power(jnp.maximum(w, 0.0), g)


def _focal_elementwise(x, t, gamma, hard_targets):
    # Numerically-stable BCE with logits (== torch BCEWithLogitsLoss 'none'):
    #   bce = max(x,0) - x*t + log(1 + exp(-|x|))
    e = jnp.exp(-jnp.abs(x))                               # EUP #1 (shared)
    bce = jnp.maximum(x, 0.0) - x * t + jnp.log1p(e)       # EUP #2 (log1p)
    if hard_targets:
        # For hard {0,1} targets pt == exp(-bce) == t*p + (1-t)*(1-p) with
        # p = sigmoid(x): drops the third heavy transcendental in favor of one
        # reciprocal + a few VPU ops. approx=False keeps full precision;
        # flip to approx=True if the consumer tolerates ~1e-3 relative error.
        inv = pl.reciprocal(1.0 + e, approx=False)
        p = jnp.where(x >= 0.0, inv, e * inv)              # stable sigmoid(x)
        pt = t * p + (1.0 - t) * (1.0 - p)
    else:
        pt = jnp.exp(-bce)                                 # EUP #3 (soft targets)
    return _modulating_factor(pt, gamma) * bce


# ---------------------------------------------------------------------------
# Kernels
# ---------------------------------------------------------------------------
def _focal_reduce_kernel(*refs, gamma, hard_targets, use_alpha, n_rows,
                         tile_rows, tiles_per_chunk, needs_mask):
    """Grid = (num_chunks [parallel], tiles_per_chunk [arbitrary])."""
    if use_alpha:
        x_ref, t_ref, a_ref, o_ref, acc_ref = refs
    else:
        x_ref, t_ref, o_ref, acc_ref = refs
        a_ref = None

    j = pl.program_id(1)

    @pl.when(j == 0)
    def _():
        acc_ref[...] = jnp.zeros_like(acc_ref)

    x = x_ref[...].astype(jnp.float32)
    t = t_ref[...].astype(jnp.float32)
    focal = _focal_elementwise(x, t, gamma, hard_targets)

    if needs_mask:
        # Logical first row of this step. The index_map clamps the *block*
        # index (no OOB reads); this unclamped logical offset makes the mask
        # zero out both the partial tail tile and any duplicate (ceil-split)
        # steps. Mask work only runs on those steps (pl.when).
        row0 = (pl.program_id(0) * tiles_per_chunk + j) * tile_rows
        is_tail = row0 + tile_rows > n_rows

        @pl.when(is_tail)
        def _():
            row_ids = jax.lax.broadcasted_iota(jnp.int32, focal.shape, 0)
            masked = jnp.where(row0 + row_ids < n_rows, focal, 0.0)
            acc_ref[...] += jnp.sum(masked, axis=0, keepdims=True)

        @pl.when(jnp.logical_not(is_tail))
        def _():
            acc_ref[...] += jnp.sum(focal, axis=0, keepdims=True)
    else:
        # Per-class partial sums into a VMEM vector accumulator (VPU work);
        # the cross-lane reduce / alpha weighting are deferred to finalize.
        acc_ref[...] += jnp.sum(focal, axis=0, keepdims=True)

    @pl.when(j == pl.num_programs(1) - 1)
    def _():
        v = acc_ref[...]
        if use_alpha:
            v = v * a_ref[...].astype(jnp.float32)
        o_ref[...] = v.reshape(1, 1, v.shape[-1])


def _focal_none_kernel(*refs, gamma, hard_targets, use_alpha):
    if use_alpha:
        x_ref, t_ref, a_ref, o_ref = refs
    else:
        x_ref, t_ref, o_ref = refs
        a_ref = None
    x = x_ref[...].astype(jnp.float32)
    t = t_ref[...].astype(jnp.float32)
    focal = _focal_elementwise(x, t, gamma, hard_targets)
    if use_alpha:
        focal = a_ref[...].astype(jnp.float32) * focal
    o_ref[...] = focal.astype(o_ref.dtype)


# ---------------------------------------------------------------------------
# Wrapper helpers
# ---------------------------------------------------------------------------
def _pick_tile_rows(n_rows, n_cols, itemsize, requested, target_block_bytes,
                    n_stream_blocks, f32_temps, vmem_budget_bytes=44 * _MIB):
    """Largest row-tile (multiple of 8) whose HBM block hits the byte target
    and whose pipeline buffers + f32 temporaries fit the VMEM budget."""
    def vmem_need(rows):
        elems = rows * n_cols
        return 2 * n_stream_blocks * elems * itemsize + f32_temps * elems * 4

    rows_all = max(8, ((n_rows + 7) // 8) * 8)
    fit_rows = max(8, (int(target_block_bytes) // (itemsize * n_cols)) // 8 * 8)
    tile = min(fit_rows, rows_all)
    if requested is not None:
        tile = min(tile, max(8, (int(requested) // 8) * 8))
    tile = max(8, tile)
    while tile > 8 and vmem_need(tile) > vmem_budget_bytes:
        tile = max(8, ((tile // 2) // 8) * 8)
    return tile


def _num_tensorcores():
    """Best-effort TensorCores per device (2 on v7x, 1 on v5e/v6e), 0=unknown."""
    try:
        info = pltpu.get_tpu_info()
        for name in ("num_cores", "core_count", "num_tensorcores",
                     "tensorcore_count", "cores_per_chip"):
            v = getattr(info, name, None)
            if isinstance(v, int) and v > 0:
                return v
    except Exception:
        pass
    try:
        v = getattr(jax.devices()[0], "num_cores", None)
        if isinstance(v, int) and v > 0:
            return v
    except Exception:
        pass
    return 0


# ---------------------------------------------------------------------------
# Public entry points
# ---------------------------------------------------------------------------
def focal_loss(inputs, targets, alpha=None, gamma=2.0, reduction="mean",
               tile_rows=None, hard_targets=False, num_chunks=None):
    """Pallas TPU focal loss.

    inputs/targets: (N, C); alpha: optional (C,).
    hard_targets=True enables the 2-transcendental fast path (valid only for
    {0,1} targets); the default keeps exact module semantics for soft targets.
    """
    assert inputs.shape == targets.shape and inputs.ndim == 2
    if reduction == "none":
        return _focal_loss_none(inputs, targets, alpha, gamma, tile_rows,
                                hard_targets)
    if reduction not in ("mean", "sum"):
        raise ValueError(f"unknown reduction {reduction!r}")
    return _focal_loss_reduce(inputs, targets, alpha, gamma, reduction,
                              tile_rows, hard_targets, num_chunks)


def _focal_loss_reduce(inputs, targets, alpha, gamma, reduction, tile_rows,
                       hard_targets, num_chunks):
    N, C = inputs.shape
    itemsize = jnp.dtype(inputs.dtype).itemsize
    use_alpha = alpha is not None

    tile = _pick_tile_rows(N, C, itemsize, tile_rows,
                           target_block_bytes=4 * _MIB,
                           n_stream_blocks=2, f32_temps=6)
    total_tiles = pl.cdiv(N, tile)

    if num_chunks is None:
        cores = _num_tensorcores()
        if cores >= 2:
            num_chunks = 2
        elif cores == 1:
            num_chunks = 1
        else:  # unknown chip: only split when per-chunk work amortizes it
            num_chunks = 2 if total_tiles >= 8 else 1
    num_chunks = max(1, min(int(num_chunks), total_tiles))

    # Ceil split so both v7x TensorCores get work even for odd tile counts.
    tiles_per_chunk = pl.cdiv(total_tiles, num_chunks)
    has_dup = num_chunks * tiles_per_chunk != total_tiles
    needs_mask = (N % tile != 0) or has_dup
    last_tile = total_tiles - 1

    def x_map(p, j):
        # Clamp: Pallas does not bounds-check block indices; duplicate steps
        # re-read the last tile and the kernel's row mask zeroes them.
        return (jnp.minimum(p * tiles_per_chunk + j, last_tile), 0)

    in_specs = [pl.BlockSpec((tile, C), x_map),
                pl.BlockSpec((tile, C), x_map)]
    operands = [inputs, targets]
    if use_alpha:
        in_specs.append(pl.BlockSpec((1, C), lambda p, j: (0, 0)))  # resident
        operands.append(jnp.asarray(alpha, jnp.float32).reshape(1, C))

    kernel = functools.partial(
        _focal_reduce_kernel, gamma=gamma, hard_targets=hard_targets,
        use_alpha=use_alpha, n_rows=N, tile_rows=tile,
        tiles_per_chunk=tiles_per_chunk, needs_mask=needs_mask)

    elems = tile * C
    vmem_need = 2 * 2 * elems * itemsize + 6 * elems * 4 + 4 * _MIB
    vmem_limit = int(min(48 * _MIB, max(32 * _MIB, vmem_need)))

    partials = pl.pallas_call(
        kernel,
        out_shape=jax.ShapeDtypeStruct((num_chunks, 1, C), jnp.float32),
        grid_spec=pltpu.PrefetchScalarGridSpec(
            num_scalar_prefetch=0,
            grid=(num_chunks, tiles_per_chunk),
            in_specs=in_specs,
            out_specs=pl.BlockSpec((1, 1, C), lambda p, j: (p, 0, 0)),
            scratch_shapes=[pltpu.VMEM((1, C), jnp.float32)],
        ),
        compiler_params=pltpu.CompilerParams(
            dimension_semantics=("parallel", "arbitrary"),
            vmem_limit_bytes=vmem_limit),
    )(*operands)

    total = jnp.sum(partials)                 # tiny (num_chunks,1,C) XLA reduce
    if reduction == "mean":
        return total / jnp.float32(N * C)
    return total


def _focal_loss_none(inputs, targets, alpha, gamma, tile_rows, hard_targets):
    N, C = inputs.shape
    itemsize = jnp.dtype(inputs.dtype).itemsize
    use_alpha = alpha is not None
    lane_dense = (C % 128 == 0) and C >= 128

    if lane_dense:
        x2d, t2d = inputs, targets
        rows, cols = N, C
        a_ops = (jnp.asarray(alpha, jnp.float32).reshape(1, C),) if use_alpha else ()
        alpha_full_block = False
    else:
        # Ragged class dim: flatten/pad to a lane-dense (rows, 128) slab so the
        # big N*C writeback uses full, unmasked vector stores.
        L = 128
        flat_len = N * C
        pad_len = ((flat_len + 8 * L - 1) // (8 * L)) * (8 * L)
        pad = pad_len - flat_len

        def to_slab(a):
            f = a.reshape(flat_len)
            if pad:
                f = jnp.pad(f, (0, pad))
            return f.reshape(pad_len // L, L)

        x2d, t2d = to_slab(inputs), to_slab(targets)
        rows, cols = x2d.shape
        if use_alpha:
            a_full = jnp.broadcast_to(
                jnp.asarray(alpha, jnp.float32).reshape(1, C), (N, C))
            a_ops = (to_slab(a_full),)
        else:
            a_ops = ()
        alpha_full_block = use_alpha

    n_stream = 3 + (1 if alpha_full_block else 0)   # x, t, out (+ alpha slab)
    tile = _pick_tile_rows(rows, cols, itemsize, tile_rows,
                           target_block_bytes=2 * _MIB,
                           n_stream_blocks=n_stream, f32_temps=6)

    in_specs = [pl.BlockSpec((tile, cols), lambda i: (i, 0)),
                pl.BlockSpec((tile, cols), lambda i: (i, 0))]
    if use_alpha:
        if alpha_full_block:
            in_specs.append(pl.BlockSpec((tile, cols), lambda i: (i, 0)))
        else:
            in_specs.append(pl.BlockSpec((1, cols), lambda i: (0, 0)))

    kernel = functools.partial(_focal_none_kernel, gamma=gamma,
                               hard_targets=hard_targets, use_alpha=use_alpha)

    elems = tile * cols
    vmem_need = 2 * n_stream * elems * itemsize + 6 * elems * 4 + 4 * _MIB
    vmem_limit = int(min(48 * _MIB, max(24 * _MIB, vmem_need)))

    out = pl.pallas_call(
        kernel,
        out_shape=jax.ShapeDtypeStruct((rows, cols), inputs.dtype),
        grid_spec=pltpu.PrefetchScalarGridSpec(
            num_scalar_prefetch=0,
            grid=(pl.cdiv(rows, tile),),
            in_specs=in_specs,
            out_specs=pl.BlockSpec((tile, cols), lambda i: (i, 0)),
        ),
        compiler_params=pltpu.CompilerParams(
            dimension_semantics=("parallel",),
            vmem_limit_bytes=vmem_limit),
    )(x2d, t2d, *a_ops)

    if lane_dense:
        return out
    return out.reshape(-1)[: N * C].reshape(N, C)


# ---------------------------------------------------------------------------
# Pure-JAX reference (mirrors the PyTorch module)
# ---------------------------------------------------------------------------
def focal_loss_ref(inputs, targets, alpha=None, gamma=2.0, reduction="mean"):
    x = inputs.astype(jnp.float32)
    t = targets.astype(jnp.float32)
    bce = jnp.maximum(x, 0.0) - x * t + jnp.log1p(jnp.exp(-jnp.abs(x)))
    pt = jnp.exp(-bce)
    fl = (1.0 - pt) ** gamma * bce
    if alpha is not None:
        fl = jnp.asarray(alpha, jnp.float32).reshape(1, -1) * fl
    if reduction == "mean":
        return fl.mean()
    if reduction == "sum":
        return fl.sum()
    return fl.astype(inputs.dtype)


if __name__ == "__main__":
    key = jax.random.PRNGKey(0)
    k1, k2, k3 = jax.random.split(key, 3)

    N, C = 32, 128
    logits = jax.random.normal(k1, (N, C), dtype=jnp.float32) * 2.0
    targets = (jax.random.uniform(k2, (N, C)) > 0.5).astype(jnp.float32)
    alpha = jax.random.uniform(k3, (C,), dtype=jnp.float32)

    # 1) Default module config: alpha=None, gamma=2, reduction='mean'.
    out = focal_loss(logits, targets)
    jax.block_until_ready(out)
    ref = focal_loss_ref(logits, targets)
    assert jnp.allclose(out, ref, rtol=1e-5, atol=1e-5), (out, ref)

    # 2) Per-class alpha + 'sum' + hard-target fast path (one fewer exp).
    out = focal_loss(logits, targets, alpha=alpha, reduction="sum",
                     hard_targets=True)
    ref = focal_loss_ref(logits, targets, alpha=alpha, reduction="sum")
    assert jnp.allclose(out, ref, rtol=1e-5, atol=1e-4), (out, ref)

    # 3) 'none' (elementwise), lane-dense C (multiple of 128).
    out_e = focal_loss(logits, targets, alpha=alpha, reduction="none")
    ref_e = focal_loss_ref(logits, targets, alpha=alpha, reduction="none")
    assert jnp.allclose(out_e, ref_e, rtol=1e-5, atol=1e-5), "none mismatch"

    # 3b) 'none' with ragged C -> flattened lane-dense slab path.
    Cr = 48
    lr = jax.random.normal(k1, (10, Cr), dtype=jnp.float32) * 2.0
    tr = (jax.random.uniform(k2, (10, Cr)) > 0.5).astype(jnp.float32)
    ar = jax.random.uniform(k3, (Cr,), dtype=jnp.float32)
    out_e = focal_loss(lr, tr, alpha=ar, reduction="none")
    ref_e = focal_loss_ref(lr, tr, alpha=ar, reduction="none")
    assert out_e.shape == (10, Cr)
    assert jnp.allclose(out_e, ref_e, rtol=1e-5, atol=1e-5), "ragged none"

    # 4) Batch not a multiple of the tile -> tail-mask path.
    N2 = 50
    l2 = jax.random.normal(k1, (N2, C), dtype=jnp.float32) * 2.0
    t2 = (jax.random.uniform(k2, (N2, C)) > 0.5).astype(jnp.float32)
    out = focal_loss(l2, t2, alpha=alpha)
    ref = focal_loss_ref(l2, t2, alpha=alpha)
    assert jnp.allclose(out, ref, rtol=1e-5, atol=1e-5), (out, ref)

    # 5) Odd tile count + forced 2-chunk ceil split (clamped index_map +
    #    duplicate-tile mask) + non-integer gamma + bf16 (dtype-aware tiling).
    N3 = 72
    l3 = (jax.random.normal(k1, (N3, C), dtype=jnp.float32) * 2.0).astype(jnp.bfloat16)
    t3 = (jax.random.uniform(k2, (N3, C)) > 0.5).astype(jnp.bfloat16)
    out = focal_loss(l3, t3, gamma=1.5, reduction="sum", tile_rows=16,
                     num_chunks=2)
    ref = focal_loss_ref(l3, t3, gamma=1.5, reduction="sum")
    assert jnp.allclose(out, ref, rtol=1e-3, atol=1e-2), (out, ref)

    jax.block_until_ready(out)
    print("KERNEL_OK")
</pallas_src>

<mosaic_0001>
module attributes {stable_mosaic.version = 11 : i64} {
  func.func @_focal_reduce_kernel(%arg0: i32, %arg1: i32, %arg2: memref<32x128xf32, #tpu.memory_space<vmem>>, %arg3: memref<32x128xf32, #tpu.memory_space<vmem>>, %arg4: memref<1x1x128xf32, #tpu.memory_space<vmem>>, %arg5: memref<1x128xf32, #tpu.memory_space<vmem>>) attributes {dimension_semantics = [#tpu.dimension_semantics<parallel>, #tpu.dimension_semantics<arbitrary>], iteration_bounds = array<i64: 1, 1>, scalar_prefetch = 0 : i64, scratch_operands = 1 : i64, tpu.core_type = #tpu.core_type<tc>, window_params = [{transform_indices = @transform_0, window_bounds = array<i64: 32, 128>}, {transform_indices = @transform_1, window_bounds = array<i64: 32, 128>}, {transform_indices = @transform_2, window_bounds = array<i64: 1, 1, 128>}]} {
    %c0_i32 = arith.constant 0 : i32
    %0 = arith.cmpi eq, %arg1, %c0_i32 : i32
    %1 = arith.extui %0 : i1 to i32
    %c0_i32_0 = arith.constant 0 : i32
    %2 = arith.cmpi ne, %1, %c0_i32_0 : i32
    scf.if %2 {
      %cst_14 = arith.constant 0.000000e+00 : f32
      %30 = vector.broadcast %cst_14 : f32 to vector<1x128xf32>
      %c0_15 = arith.constant 0 : index
      %c0_16 = arith.constant 0 : index
      %31 = vector.load %arg5[%c0_15, %c0_16] : memref<1x128xf32, #tpu.memory_space<vmem>>, vector<1x128xf32>
      tpu.vector_store %arg5[%c0_15, %c0_16], %30 {strides = array<i32>} : memref<1x128xf32, #tpu.memory_space<vmem>>, vector<1x128xf32>,
    } else {
    }
    %c0 = arith.constant 0 : index
    %c0_1 = arith.constant 0 : index
    %3 = vector.load %arg2[%c0, %c0_1] : memref<32x128xf32, #tpu.memory_space<vmem>>, vector<32x128xf32>
    %c0_2 = arith.constant 0 : index
    %c0_3 = arith.constant 0 : index
    %4 = vector.load %arg3[%c0_2, %c0_3] : memref<32x128xf32, #tpu.memory_space<vmem>>, vector<32x128xf32>
    %5 = math.absf %3 : vector<32x128xf32>
    %cst = arith.constant 0.000000e+00 : f32
    %6 = vector.broadcast %cst : f32 to vector<32x128xf32>
    %7 = arith.subf %6, %5 : vector<32x128xf32>
    %8 = math.exp %7 : vector<32x128xf32>
    %cst_4 = arith.constant 0.000000e+00 : f32
    %9 = vector.broadcast %cst_4 : f32 to vector<32x128xf32>
    %10 = arith.maximumf %3, %9 : vector<32x128xf32>
    %11 = arith.mulf %3, %4 : vector<32x128xf32>
    %12 = arith.subf %10, %11 : vector<32x128xf32>
    %13 = math.log1p %8 : vector<32x128xf32>
    %14 = arith.addf %12, %13 : vector<32x128xf32>
    %cst_5 = arith.constant 0.000000e+00 : f32
    %15 = vector.broadcast %cst_5 : f32 to vector<32x128xf32>
    %16 = arith.subf %15, %14 : vector<32x128xf32>
    %17 = math.exp %16 : vector<32x128xf32>
    %cst_6 = arith.constant 1.000000e+00 : f32
    %18 = vector.broadcast %cst_6 : f32 to vector<32x128xf32>
    %19 = arith.subf %18, %17 : vector<32x128xf32>
    %20 = arith.mulf %19, %19 : vector<32x128xf32>
    %21 = arith.mulf %20, %14 : vector<32x128xf32>
    %c0_7 = arith.constant 0 : index
    %c0_8 = arith.constant 0 : index
    %22 = vector.load %arg5[%c0_7, %c0_8] : memref<1x128xf32, #tpu.memory_space<vmem>>, vector<1x128xf32>
    %cst_9 = arith.constant dense<0.000000e+00> : vector<128xf32>
    %23 = vector.multi_reduction <add>, %21, %cst_9 [0] : vector<32x128xf32> to vector<128xf32>
    %24 = vector.shape_cast %23 : vector<128xf32> to vector<1x128xf32>
    %25 = arith.addf %22, %24 : vector<1x128xf32>
    %c0_10 = arith.constant 0 : index
    %c0_11 = arith.constant 0 : index
    %26 = vector.load %arg5[%c0_10, %c0_11] : memref<1x128xf32, #tpu.memory_space<vmem>>, vector<1x128xf32>
    tpu.vector_store %arg5[%c0_10, %c0_11], %25 {strides = array<i32>} : memref<1x128xf32, #tpu.memory_space<vmem>>, vector<1x128xf32>,
    %c0_i32_12 = arith.constant 0 : i32
    %27 = arith.cmpi eq, %arg1, %c0_i32_12 : i32
    %28 = arith.extui %27 : i1 to i32
    %c0_i32_13 = arith.constant 0 : i32
    %29 = arith.cmpi ne, %28, %c0_i32_13 : i32
    scf.if %29 {
      %c0_14 = arith.constant 0 : index
      %c0_15 = arith.constant 0 : index
      %30 = vector.load %arg5[%c0_14, %c0_15] : memref<1x128xf32, #tpu.memory_space<vmem>>, vector<1x128xf32>
      %31 = vector.shape_cast %30 : vector<1x128xf32> to vector<1x1x128xf32>
      %c0_16 = arith.constant 0 : index
      %c0_17 = arith.constant 0 : index
      %c0_18 = arith.constant 0 : index
      %32 = vector.load %arg4[%c0_16, %c0_17, %c0_18] : memref<1x1x128xf32, #tpu.memory_space<vmem>>, vector<1x1x128xf32>
      tpu.vector_store %arg4[%c0_16, %c0_17, %c0_18], %31 {strides = array<i32>} : memref<1x1x128xf32, #tpu.memory_space<vmem>>, vector<1x1x128xf32>,
    } else {
    }
    return
  }
  func.func @transform_0(%arg0: i32, %arg1: i32) -> (i32, i32) {
    %c1_i32 = arith.constant 1 : i32
    %0 = arith.muli %arg0, %c1_i32 : i32
    %1 = arith.addi %0, %arg1 : i32
    %c0_i32 = arith.constant 0 : i32
    %2 = arith.minsi %1, %c0_i32 : i32
    %c0_i32_0 = arith.constant 0 : i32
    %c0_i32_1 = arith.constant 0 : i32
    return %2, %c0_i32_0 : i32, i32
  }
  func.func @transform_1(%arg0: i32, %arg1: i32) -> (i32, i32) {
    %c1_i32 = arith.constant 1 : i32
    %0 = arith.muli %arg0, %c1_i32 : i32
    %1 = arith.addi %0, %arg1 : i32
    %c0_i32 = arith.constant 0 : i32
    %2 = arith.minsi %1, %c0_i32 : i32
    %c0_i32_0 = arith.constant 0 : i32
    %c0_i32_1 = arith.constant 0 : i32
    return %2, %c0_i32_0 : i32, i32
  }
  func.func @transform_2(%arg0: i32, %arg1: i32) -> (i32, i32, i32) {
    %c0_i32 = arith.constant 0 : i32
    %c0_i32_0 = arith.constant 0 : i32
    %c0_i32_1 = arith.constant 0 : i32
    return %arg0, %c0_i32, %c0_i32_0 : i32, i32, i32
  }
}

</mosaic_0001>

<bundles_post_ra>
// kernel: tpu_custom_call.1
= control target key start
LH: loop header
LB: loop body
LE: loop exit
PB: predicated region body
PF: predicated region fallthrough
CT: control target
= control target key end

     0   :  { %7 = vsyncpa [#allocation4], 0  ;;  %s383_s0 = inlined_call_operand.hbm [shape: f32[32,128], index: 0, kind: input, shape index: {}]   ;;  %s384_s1 = inlined_call_operand.hbm [shape: f32[32,128], index: 1, kind: input, shape index: {}]   ;;  %s385_s2 = inlined_call_operand.hbm [shape: f32[1,1,128], index: 2, kind: output, shape index: {}]  }
   0x1   :  { %8 = vsyncpa [#allocation7], 0 }
   0x2   :  { %9 = vsyncpa [#allocation5], 0  ;;  %s304_s9 = smov [#allocation3]   ;;  %s232_s13 = scalar_lea.hbm %s383_s0, 512 }
   0x3   :  { %s21_s10 = sshll.u32 %s304_s9, 4  ;;  %p233_p0 = scmp.ne.s32.totalorder %s383_s0, %s232_s13  ;;  %s22_s10 = int_to_ptr.vmem [resolvable:$true] %s21_s10 }
   0x4   :  { %p236_p1 = scmp.lt.u32.totalorder %s232_s13, %s383_s0 }
   0x6   :  { %p238_p2 = pnand %p236_p1, %p233_p0 }
   0x8   :  { %241 = shalt.err (!%p238_p2)
}
   0x9   :  { %s242_s18 = scalar_lea.vmem %s22_s10, 512  ;;  %p247_p4 = scmp.lt.s32.totalorder %s22_s10, %s22_s10 }
   0xa   :  { %p243_p3 = scmp.ne.s32.totalorder %s22_s10, %s242_s18  ;;  %p248_p5 = scmp.lt.s32.totalorder %s242_s18, %s242_s18 }
   0xc   :  { %p249_p6 = por %p248_p5, %p247_p4 }
   0xe   :  { %p250_p7 = pnand %p249_p6, %p243_p3 }
  0x10   :  { %253 = shalt.err (!%p250_p7)
}
  0x11   :  { %s305_s19 = smov 128   ;;  %s306_s20 = smov 8  }
  0x12   :  { %27 = dma.hbm_to_vmem [thread:$0]  %s383_s0, 512, %s22_s10, [#allocation4], %s305_s19, %s305_s19, %s306_s20  }
  0x13   :  { %s307_s23 = smov [#allocation6]   ;;  %s254_s27 = scalar_lea.hbm %s384_s1, 512 }
  0x14   :  { %s39_s24 = sshll.u32 %s307_s23, 4  ;;  %p255_p8 = scmp.ne.s32.totalorder %s384_s1, %s254_s27  ;;  %s40_s24 = int_to_ptr.vmem [resolvable:$true] %s39_s24 }
  0x15   :  { %p258_p9 = scmp.lt.u32.totalorder %s254_s27, %s384_s1 }
  0x17   :  { %p260_p10 = pnand %p258_p9, %p255_p8 }
  0x19   :  { %263 = shalt.err (!%p260_p10)
}
  0x1a   :  { %s264_s4 = scalar_lea.vmem %s40_s24, 512  ;;  %p269_p12 = scmp.lt.s32.totalorder %s40_s24, %s40_s24 }
  0x1b   :  { %p265_p11 = scmp.ne.s32.totalorder %s40_s24, %s264_s4  ;;  %p270_p13 = scmp.lt.s32.totalorder %s264_s4, %s264_s4 }
  0x1d   :  { %p271_p0 = por %p270_p13, %p269_p12 }
  0x1f   :  { %p272_p1 = pnand %p271_p0, %p265_p11 }
  0x21   :  { %275 = shalt.err (!%p272_p1)
}
  0x22   :  { %45 = dma.hbm_to_vmem [thread:$0]  %s384_s1, 512, %s40_s24, [#allocation7], %s305_s19, %s305_s19, %s306_s20  }
  0x23   :  { %298 = dma.done.wait [#allocation4], 512  }
  0x24   :  { %299 = vsyncadd [#allocation4], 4294966784 }
  0x25   :  { %300 = dma.done.wait [#allocation7], 512  }
  0x26   :  { %301 = vsyncadd [#allocation7], 4294966784  ;;  %v308_v0 = vmov 0.0   ;;  %v65_v1 = vld [vmem:[#allocation3] sm:$0xff]  ;;  %v66_v2 = vld [vmem:[#allocation3 + $0x8] sm:$0xff]  ;;  %s309_s1 = smov [#allocation8]  }
  0x27   :  { %64 = vst [vmem:[#allocation2] sm:$0x1] %v308_v0  ;;  %v349_v3 = vld [vmem:[#allocation3 + $0x10] sm:$0xff]  ;;  %v351_v4 = vld [vmem:[#allocation3 + $0x18] sm:$0xff]  ;;  %v73_v5 = vand.u32 2147483647, %v65_v1 }
  0x28   :  { %v74_v6 = vand.u32 2147483647, %v66_v2  ;;  %v75_v7 = vand.u32 2147483647, %v349_v3  ;;  %v76_v8 = vand.u32 2147483647, %v351_v4 }
  0x29   :  { %v77_v9 = vsub.f32 0.0, %v73_v5  ;;  %v69_v27 = vld [vmem:[#allocation6] sm:$0xff]  ;;  %v70_v29 = vld [vmem:[#allocation6 + $0x8] sm:$0xff]  ;;  %v71_v30 = vld [vmem:[#allocation6 + $0x10] sm:$0xff]  ;;  %v89_v34 = vmax.f32 %v65_v1, 0.0  ;;  %v90_v38 = vmax.f32 %v66_v2, 0.0 }
  0x2a   :  { %v78_v10 = vsub.f32 0.0, %v74_v6  ;;  %v79_v11 = vsub.f32 0.0, %v75_v7  ;;  %v80_v12 = vsub.f32 0.0, %v76_v8  ;;  %v72_v33 = vld [vmem:[#allocation6 + $0x18] sm:$0xff]  ;;  %v93_v35 = vmul.f32 %v69_v27, %v65_v1  ;;  %s188_s6 = sshll.u32 %s309_s1, 4  ;;  %s189_s6 = int_to_ptr.vmem [resolvable:$true] %s188_s6 }
  0x2b   :  { %v81_v13 = vmul.f32 1.442695, %v77_v9  ;;  %v94_v39 = vmul.f32 %v70_v29, %v66_v2  ;;  %v91_v42 = vmax.f32 %v349_v3, 0.0  ;;  %v95_v43 = vmul.f32 %v71_v30, %v349_v3  ;;  %s276_s7 = scalar_lea.vmem %s189_s6, 16  ;;  %s280_s8 = scalar_lea.vmem %s189_s6, 32 }
  0x2c   :  { %v83_v14 = vmul.f32 1.442695, %v78_v10  ;;  %v85_v15 = vmul.f32 1.442695, %v79_v11  ;;  %v87_v16 = vmul.f32 1.442695, %v80_v12  ;;  %v96_v46 = vmul.f32 %v72_v33, %v351_v4  ;;  %p277_p2 = scmp.ne.s32.totalorder %s189_s6, %s276_s7  ;;  %p281_p3 = scmp.lt.s32.totalorder %s189_s6, %s189_s6 }
  0x2d   :  { %208 = vpow2.f32 %v81_v13  ;;  %v92_v45 = vmax.f32 %v351_v4, 0.0  ;;  %v97_v50 = vsub.f32 %v89_v34, %v93_v35  ;;  %v98_v55 = vsub.f32 %v90_v38, %v94_v39  ;;  %p282_p4 = scmp.lt.s32.totalorder %s280_s8, %s276_s7 }
  0x2e   :  { %210 = vpow2.f32 %v83_v14  ;;  %v99_v60 = vsub.f32 %v91_v42, %v95_v43  ;;  %v165_v43 = vld [vmem:[#allocation2] sm:$0x1] }
  0x2f   :  { %212 = vpow2.f32 %v85_v15  ;;  %v100_v2 = vsub.f32 %v92_v45, %v96_v46  ;;  %p283_p5 = por %p282_p4, %p281_p3 }
  0x30   :  { %214 = vpow2.f32 %v87_v16 }
  0x31   :  { %p284_p6 = pnand %p283_p5, %p277_p2 }
  0x37   :  { %v209_v17 = vpop.eup %208 }
  0x38   :  { %v211_v18 = vpop.eup %210  ;;  %v101_v19 = vadd.f32 1.0, %v209_v17  ;;  %v104_v24 = vmul.f32 -0.5, %v209_v17  ;;  %v107_v36 = vand.u32 2147483647, %v209_v17 }
  0x39   :  { %v213_v20 = vpop.eup %212  ;;  %v110_v21 = vadd.f32 1.0, %v211_v18  ;;  %v113_v25 = vmul.f32 -0.5, %v211_v18  ;;  %v116_v40 = vand.u32 2147483647, %v211_v18 }
  0x3a   :  { %v215_v22 = vpop.eup %214  ;;  %216 = vlog2.f32 %v101_v19  ;;  %v119_v23 = vadd.f32 1.0, %v213_v20  ;;  %v122_v28 = vmul.f32 -0.5, %v213_v20  ;;  %v105_v31 = vadd.f32 1.0, %v104_v24 }
  0x3b   :  { %218 = vlog2.f32 %v110_v21  ;;  %v128_v26 = vadd.f32 1.0, %v215_v22  ;;  %v131_v32 = vmul.f32 -0.5, %v215_v22  ;;  %v114_v37 = vadd.f32 1.0, %v113_v25 }
  0x3c   :  { %220 = vlog2.f32 %v119_v23  ;;  %v123_v41 = vadd.f32 1.0, %v122_v28  ;;  %v125_v44 = vand.u32 2147483647, %v213_v20  ;;  %v106_v47 = vmul.f32 %v209_v17, %v105_v31 }
  0x3d   :  { %222 = vlog2.f32 %v128_v26  ;;  %v132_v48 = vadd.f32 1.0, %v131_v32  ;;  %vm359_vm0 = vcmp.lt.f32.partialorder %v107_v36, 0.0004427343  ;;  %v115_v52 = vmul.f32 %v211_v18, %v114_v37 }
  0x3e   :  { %v134_v53 = vand.u32 2147483647, %v215_v22  ;;  %vm363_vm1 = vcmp.lt.f32.partialorder %v116_v40, 0.0004427343  ;;  %v124_v58 = vmul.f32 %v213_v20, %v123_v41  ;;  %vm126_vm2 = vcmp.lt.f32.partialorder %v125_v44, 0.0004427343 }
  0x3f   :  { %v133_v0 = vmul.f32 %v215_v22, %v132_v48 }
  0x40   :  { %vm135_vm3 = vcmp.lt.f32.partialorder %v134_v53, 0.0004427343 }
  0x44   :  { %v217_v49 = vpop.eup %216 }
  0x45   :  { %v219_v54 = vpop.eup %218  ;;  %v103_v56 = vmul.f32 0.6931472, %v217_v49 }
  0x46   :  { %v221_v59 = vpop.eup %220  ;;  %v112_v61 = vmul.f32 0.6931472, %v219_v54 }
  0x47   :  { %v109_v62 = vsel %vm359_vm0, %v106_v47, %v103_v56  ;;  %v121_v63 = vmul.f32 0.6931472, %v221_v59  ;;  %v223_v1 = vpop.eup %222 }
  0x48   :  { %v118_v3 = vsel %vm363_vm1, %v115_v52, %v112_v61  ;;  %v137_v4 = vadd.f32 %v109_v62, %v97_v50  ;;  %v130_v6 = vmul.f32 0.6931472, %v223_v1 }
  0x49   :  { %v127_v5 = vsel %vm126_vm2, %v124_v58, %v121_v63  ;;  %v138_v7 = vadd.f32 %v118_v3, %v98_v55 }
  0x4a   :  { %v139_v8 = vadd.f32 %v127_v5, %v99_v60  ;;  %v141_v9 = vsub.f32 0.0, %v137_v4  ;;  %v136_v10 = vsel %vm135_vm3, %v133_v0, %v130_v6 }
  0x4b   :  { %v142_v11 = vsub.f32 0.0, %v138_v7  ;;  %v140_v12 = vadd.f32 %v136_v10, %v100_v2 }
  0x4c   :  { %v143_v13 = vsub.f32 0.0, %v139_v8  ;;  %v145_v14 = vmul.f32 1.442695, %v141_v9 }
  0x4d   :  { %v147_v15 = vmul.f32 1.442695, %v142_v11  ;;  %v144_v16 = vsub.f32 0.0, %v140_v12 }
  0x4e   :  { %224 = vpow2.f32 %v145_v14  ;;  %v149_v17 = vmul.f32 1.442695, %v143_v13 }
  0x4f   :  { %226 = vpow2.f32 %v147_v15  ;;  %v151_v18 = vmul.f32 1.442695, %v144_v16 }
  0x50   :  { %228 = vpow2.f32 %v149_v17 }
  0x51   :  { %230 = vpow2.f32 %v151_v18 }
  0x58   :  { %v225_v19 = vpop.eup %224 }
  0x59   :  { %v227_v20 = vpop.eup %226  ;;  %v153_v21 = vsub.f32 1.0, %v225_v19 }
  0x5a   :  { %v229_v22 = vpop.eup %228  ;;  %v154_v23 = vsub.f32 1.0, %v227_v20 }
  0x5b   :  { %v155_v24 = vsub.f32 1.0, %v229_v22  ;;  %v157_v25 = vmul.f32 %v153_v21, %v153_v21  ;;  %v231_v26 = vpop.eup %230 }
  0x5c   :  { %v158_v27 = vmul.f32 %v154_v23, %v154_v23  ;;  %v156_v28 = vsub.f32 1.0, %v231_v26 }
  0x5d   :  { %v159_v29 = vmul.f32 %v155_v24, %v155_v24  ;;  %v161_v30 = vmul.f32 %v157_v25, %v137_v4 }
  0x5e   :  { %v162_v31 = vmul.f32 %v158_v27, %v138_v7  ;;  %v160_v32 = vmul.f32 %v156_v28, %v156_v28 }
  0x5f   :  { %v163_v33 = vmul.f32 %v159_v29, %v139_v8 }
  0x60   :  { %v166_v34 = vadd.f32 %v162_v31, %v161_v30  ;;  %v164_v35 = vmul.f32 %v160_v32, %v140_v12 }
  0x62   :  { %v167_v36 = vadd.f32 %v166_v34, %v163_v33 }
  0x64   :  { %v168_v37 = vadd.f32 %v167_v36, %v164_v35 }
  0x66   :  { %v169_v38 = vrot.slane %v168_v37, 4 }
  0x68   :  { %v170_v39 = vadd.f32 %v169_v38, %v168_v37 }
  0x6a   :  { %v171_v40 = vrot.slane %v170_v39, 2 }
  0x6c   :  { %v172_v41 = vadd.f32 %v171_v40, %v170_v39 }
  0x6e   :  { %v173_v42 = vrot.slane %v172_v41, 1 }
  0x70   :  { %v174_v44 = vadd.f32 %v173_v42, %v172_v41 }
  0x72   :  { %v175_v45 = vadd.f32 %v174_v44, %v165_v43 }
  0x74   :  { %176 = vst [vmem:[#allocation2] sm:$0x1] %v175_v45 }
  0x7b   :  { %v180_v46 = vld [vmem:[#allocation2] sm:$0x1] }
  0x7c   :  { %181 = vst [vmem:[#allocation8] sm:$0x1] %v180_v46 }
  0x7d   :  { %287 = shalt.err (!%p284_p6)
}
  0x7e   :  { %s288_s11 = scalar_lea.hbm %s385_s2, 16 }
  0x7f   :  { %p289_p7 = scmp.ne.s32.totalorder %s385_s2, %s288_s11  ;;  %p292_p8 = scmp.lt.u32.totalorder %s288_s11, %s385_s2 }
  0x81   :  { %p294_p9 = pnand %p292_p8, %p289_p7 }
  0x83   :  { %297 = shalt.err (!%p294_p9)
}
  0x84   :  { %191 = dma.vmem_to_hbm [thread:$0]  %s189_s6, 16, %s385_s2, [#allocation5]  }
  0x85   :  { %302 = dma.done.wait [#allocation5], 16  }
  0x86   :  { %303 = vsyncadd [#allocation5], 4294967280 }
  0x87   :  { %195 = vsyncpa [#allocation4], 1 }
  0x88   :  { %196 = vsyncpa [#allocation7], 1 }
  0x89   :  { %197 = vsyncpa [#allocation5], 1 }

</bundles_post_ra>
